<compile_context>
chip_gen: v6e
topology: v6e:2x2x1
jax: 0.10.0
libtpu: 0.0.40
codegen_flags: <defaults>
</compile_context>

<pallas_src>
import jax
import jax.numpy as jnp
from jax.experimental import pallas as pl
from jax.experimental.pallas import tpu as pltpu

NEG_SLOPE = 0.02
LN_EPS = 1e-5
D_IN, D_HID, D_OUT = 784, 200, 10
D_OUT_PAD = 128          # lane-dense padded output width (multiple of 128)
MAX_TILE_B = 2048        # sized for v7x (64 MiB physical / double-buffered x tile)


def _round_up(n, m):
    return ((n + m - 1) // m) * m


def _leaky_relu(x, slope=NEG_SLOPE):
    return jnp.where(x >= 0, x, slope * x)


def classifymni_kernel(x_ref, w1_ref, b1_ref, g_ref, beta_ref, w2_ref, b2_ref,
                       o_ref):
    """Fused MLP forward on one batch tile:
       matmul -> leaky_relu -> layernorm -> matmul -> leaky_relu."""
    x = x_ref[...]                                              # (TILE_B, 784) f32

    # Linear(784, 200)
    h = jnp.dot(x, w1_ref[...], preferred_element_type=jnp.float32) + b1_ref[...]

    # LeakyReLU(0.02)
    h = _leaky_relu(h)

    # LayerNorm(200): normalize over last dim, biased variance, eps=1e-5
    mean = jnp.mean(h, axis=-1, keepdims=True)
    centered = h - mean
    var = jnp.mean(centered * centered, axis=-1, keepdims=True)
    h = centered * jax.lax.rsqrt(var + LN_EPS)
    h = h * g_ref[...] + beta_ref[...]

    # Linear(200, 10) -- computed into a 128-wide lane-dense slab
    y = jnp.dot(h, w2_ref[...], preferred_element_type=jnp.float32) + b2_ref[...]

    # LeakyReLU(0.02)  (padding columns are 0 and stay 0)
    o_ref[...] = _leaky_relu(y)


def classifymni_forward(x, params):
    """x: (B, 784) float32. params: dict of weights. Returns (B, 10) float32."""
    w1, b1, gamma, beta, w2, b2 = (params["w1"], params["b1"], params["gamma"],
                                   params["beta"], params["w2"], params["b2"])
    B = x.shape[0]

    # Batch tiling: tile must be a multiple of 8 (sublane); cap at MAX_TILE_B.
    tile_b = min(MAX_TILE_B, _round_up(B, 8))
    b_pad = _round_up(B, tile_b)
    if b_pad != B:
        x = jnp.pad(x, ((0, b_pad - B), (0, 0)))

    # Lane-dense output: pad second-layer weights/bias 10 -> 128 columns.
    w2p = jnp.pad(w2, ((0, 0), (0, D_OUT_PAD - D_OUT)))
    b2p = jnp.pad(b2, ((0, 0), (0, D_OUT_PAD - D_OUT)))

    grid = (b_pad // tile_b,)

    # Resident (constant index_map) specs for parameters.
    w1_spec = pl.BlockSpec((D_IN, D_HID), lambda i: (0, 0))
    vec_spec = pl.BlockSpec((1, D_HID), lambda i: (0, 0))
    w2_spec = pl.BlockSpec((D_HID, D_OUT_PAD), lambda i: (0, 0))
    b2_spec = pl.BlockSpec((1, D_OUT_PAD), lambda i: (0, 0))

    cost = pl.CostEstimate(
        flops=2 * b_pad * D_IN * D_HID + 2 * b_pad * D_HID * D_OUT_PAD
              + 8 * b_pad * D_HID,
        transcendentals=b_pad,                       # one rsqrt per row
        bytes_accessed=4 * (b_pad * D_IN + b_pad * D_OUT_PAD
                            + D_IN * D_HID + D_HID * D_OUT_PAD + 4 * D_HID),
    )

    out_padded = pl.pallas_call(
        classifymni_kernel,
        out_shape=jax.ShapeDtypeStruct((b_pad, D_OUT_PAD), jnp.float32),
        grid=grid,
        in_specs=[
            pl.BlockSpec((tile_b, D_IN), lambda i: (i, 0)),   # x: streamed
            w1_spec, vec_spec, vec_spec, vec_spec,            # w1, b1, gamma, beta
            w2_spec, b2_spec,                                 # w2, b2 (padded)
        ],
        out_specs=pl.BlockSpec((tile_b, D_OUT_PAD), lambda i: (i, 0)),
        compiler_params=pltpu.CompilerParams(
            dimension_semantics=("parallel",),
            vmem_limit_bytes=48 * 1024 * 1024,
        ),
        cost_estimate=cost,
    )(x, w1, b1, gamma, beta, w2p, b2p)

    return out_padded[:B, :D_OUT]


def init_params(key):
    """Deterministic init mimicking PyTorch defaults (U(-1/sqrt(fan_in), +))."""
    k1, k2, k3, k4 = jax.random.split(key, 4)
    bound1 = 1.0 / jnp.sqrt(jnp.float32(D_IN))
    bound2 = 1.0 / jnp.sqrt(jnp.float32(D_HID))
    params = {
        # stored as (in, out) so the kernel computes x @ W
        "w1": jax.random.uniform(k1, (D_IN, D_HID), jnp.float32, -bound1, bound1),
        "b1": jax.random.uniform(k2, (1, D_HID), jnp.float32, -bound1, bound1),
        "gamma": jnp.ones((1, D_HID), jnp.float32),
        "beta": jnp.zeros((1, D_HID), jnp.float32),
        "w2": jax.random.uniform(k3, (D_HID, D_OUT), jnp.float32, -bound2, bound2),
        "b2": jax.random.uniform(k4, (1, D_OUT), jnp.float32, -bound2, bound2),
    }
    return params


def reference_forward(x, p):
    """Pure-JAX reference for correctness check."""
    h = x @ p["w1"] + p["b1"]
    h = jnp.where(h >= 0, h, NEG_SLOPE * h)
    mean = jnp.mean(h, axis=-1, keepdims=True)
    var = jnp.mean((h - mean) ** 2, axis=-1, keepdims=True)
    h = (h - mean) * jax.lax.rsqrt(var + LN_EPS) * p["gamma"] + p["beta"]
    y = h @ p["w2"] + p["b2"]
    return jnp.where(y >= 0, y, NEG_SLOPE * y)


if __name__ == "__main__":
    key = jax.random.PRNGKey(0)
    kx, kp = jax.random.split(key)

    B = 8  # small batch
    x = jax.random.uniform(kx, (B, D_IN), jnp.float32)  # MNIST-like pixels in [0,1)
    params = init_params(kp)

    out = classifymni_forward(x, params)
    out = jax.block_until_ready(out)

    ref = reference_forward(x, params)
    assert out.shape == (B, D_OUT), out.shape
    assert jnp.allclose(out, ref, atol=1e-4, rtol=1e-4), (
        float(jnp.max(jnp.abs(out - ref))))

    print("KERNEL_OK")
</pallas_src>

<mosaic_0001>
module attributes {stable_mosaic.version = 11 : i64} {
  func.func @classifymni_kernel(%arg0: i32, %arg1: memref<8x784xf32, #tpu.memory_space<vmem>>, %arg2: memref<784x200xf32, #tpu.memory_space<vmem>>, %arg3: memref<1x200xf32, #tpu.memory_space<vmem>>, %arg4: memref<1x200xf32, #tpu.memory_space<vmem>>, %arg5: memref<1x200xf32, #tpu.memory_space<vmem>>, %arg6: memref<200x128xf32, #tpu.memory_space<vmem>>, %arg7: memref<1x128xf32, #tpu.memory_space<vmem>>, %arg8: memref<8x128xf32, #tpu.memory_space<vmem>>) attributes {dimension_semantics = [#tpu.dimension_semantics<parallel>], iteration_bounds = array<i64: 1>, scalar_prefetch = 0 : i64, scratch_operands = 0 : i64, tpu.core_type = #tpu.core_type<tc>, window_params = [{transform_indices = @transform_0, window_bounds = array<i64: 8, 784>}, {pipeline_mode = #tpu.pipeline_mode<synchronous>, transform_indices = @transform_1, window_bounds = array<i64: 784, 200>}, {pipeline_mode = #tpu.pipeline_mode<synchronous>, transform_indices = @transform_2, window_bounds = array<i64: 1, 200>}, {pipeline_mode = #tpu.pipeline_mode<synchronous>, transform_indices = @transform_3, window_bounds = array<i64: 1, 200>}, {pipeline_mode = #tpu.pipeline_mode<synchronous>, transform_indices = @transform_4, window_bounds = array<i64: 1, 200>}, {pipeline_mode = #tpu.pipeline_mode<synchronous>, transform_indices = @transform_5, window_bounds = array<i64: 200, 128>}, {pipeline_mode = #tpu.pipeline_mode<synchronous>, transform_indices = @transform_6, window_bounds = array<i64: 1, 128>}, {transform_indices = @transform_7, window_bounds = array<i64: 8, 128>}]} {
    %c0 = arith.constant 0 : index
    %c0_0 = arith.constant 0 : index
    %0 = vector.load %arg1[%c0, %c0_0] : memref<8x784xf32, #tpu.memory_space<vmem>>, vector<8x784xf32>
    %c0_1 = arith.constant 0 : index
    %c0_2 = arith.constant 0 : index
    %1 = vector.load %arg2[%c0_1, %c0_2] : memref<784x200xf32, #tpu.memory_space<vmem>>, vector<784x200xf32>
    %cst = arith.constant dense<0.000000e+00> : vector<8x200xf32>
    %2 = tpu.matmul %0, %1, %cst {dimension_numbers = #tpu.dot_dimension_numbers<[1], [0], [0], [1], [0, 0, 1, 1], [], []>} : vector<8x784xf32>, vector<784x200xf32>, vector<8x200xf32> -> vector<8x200xf32>
    %c0_3 = arith.constant 0 : index
    %c0_4 = arith.constant 0 : index
    %3 = vector.load %arg3[%c0_3, %c0_4] : memref<1x200xf32, #tpu.memory_space<vmem>>, vector<1x200xf32>
    %4 = vector.broadcast %3 : vector<1x200xf32> to vector<8x200xf32>
    %5 = arith.addf %2, %4 : vector<8x200xf32>
    %cst_5 = arith.constant 0.000000e+00 : f32
    %6 = vector.broadcast %cst_5 : f32 to vector<8x200xf32>
    %7 = arith.cmpf oge, %5, %6 : vector<8x200xf32>
    %cst_6 = arith.constant 2.000000e-02 : f32
    %8 = vector.broadcast %cst_6 : f32 to vector<8x200xf32>
    %9 = arith.mulf %8, %5 : vector<8x200xf32>
    %10 = arith.select %7, %5, %9 : vector<8x200xi1>, vector<8x200xf32>
    %cst_7 = arith.constant dense<0.000000e+00> : vector<8xf32>
    %11 = vector.multi_reduction <add>, %10, %cst_7 [1] : vector<8x200xf32> to vector<8xf32>
    %12 = vector.shape_cast %11 : vector<8xf32> to vector<8x1xf32>
    %cst_8 = arith.constant 2.000000e+02 : f32
    %13 = vector.broadcast %cst_8 : f32 to vector<8x1xf32>
    %14 = arith.divf %12, %13 : vector<8x1xf32>
    %15 = vector.broadcast %14 : vector<8x1xf32> to vector<8x200xf32>
    %16 = arith.subf %10, %15 : vector<8x200xf32>
    %17 = arith.mulf %16, %16 : vector<8x200xf32>
    %cst_9 = arith.constant dense<0.000000e+00> : vector<8xf32>
    %18 = vector.multi_reduction <add>, %17, %cst_9 [1] : vector<8x200xf32> to vector<8xf32>
    %19 = vector.shape_cast %18 : vector<8xf32> to vector<8x1xf32>
    %cst_10 = arith.constant 2.000000e+02 : f32
    %20 = vector.broadcast %cst_10 : f32 to vector<8x1xf32>
    %21 = arith.divf %19, %20 : vector<8x1xf32>
    %cst_11 = arith.constant 9.99999974E-6 : f32
    %22 = vector.broadcast %cst_11 : f32 to vector<8x1xf32>
    %23 = arith.addf %21, %22 : vector<8x1xf32>
    %24 = math.rsqrt %23 : vector<8x1xf32>
    %25 = vector.broadcast %24 : vector<8x1xf32> to vector<8x200xf32>
    %26 = arith.mulf %16, %25 : vector<8x200xf32>
    %c0_12 = arith.constant 0 : index
    %c0_13 = arith.constant 0 : index
    %27 = vector.load %arg4[%c0_12, %c0_13] : memref<1x200xf32, #tpu.memory_space<vmem>>, vector<1x200xf32>
    %28 = vector.broadcast %27 : vector<1x200xf32> to vector<8x200xf32>
    %29 = arith.mulf %26, %28 : vector<8x200xf32>
    %c0_14 = arith.constant 0 : index
    %c0_15 = arith.constant 0 : index
    %30 = vector.load %arg5[%c0_14, %c0_15] : memref<1x200xf32, #tpu.memory_space<vmem>>, vector<1x200xf32>
    %31 = vector.broadcast %30 : vector<1x200xf32> to vector<8x200xf32>
    %32 = arith.addf %29, %31 : vector<8x200xf32>
    %c0_16 = arith.constant 0 : index
    %c0_17 = arith.constant 0 : index
    %33 = vector.load %arg6[%c0_16, %c0_17] : memref<200x128xf32, #tpu.memory_space<vmem>>, vector<200x128xf32>
    %cst_18 = arith.constant dense<0.000000e+00> : vector<8x128xf32>
    %34 = tpu.matmul %32, %33, %cst_18 {dimension_numbers = #tpu.dot_dimension_numbers<[1], [0], [0], [1], [0, 0, 1, 1], [], []>} : vector<8x200xf32>, vector<200x128xf32>, vector<8x128xf32> -> vector<8x128xf32>
    %c0_19 = arith.constant 0 : index
    %c0_20 = arith.constant 0 : index
    %35 = vector.load %arg7[%c0_19, %c0_20] : memref<1x128xf32, #tpu.memory_space<vmem>>, vector<1x128xf32>
    %36 = vector.broadcast %35 : vector<1x128xf32> to vector<8x128xf32>
    %37 = arith.addf %34, %36 : vector<8x128xf32>
    %cst_21 = arith.constant 0.000000e+00 : f32
    %38 = vector.broadcast %cst_21 : f32 to vector<8x128xf32>
    %39 = arith.cmpf oge, %37, %38 : vector<8x128xf32>
    %cst_22 = arith.constant 2.000000e-02 : f32
    %40 = vector.broadcast %cst_22 : f32 to vector<8x128xf32>
    %41 = arith.mulf %40, %37 : vector<8x128xf32>
    %42 = arith.select %39, %37, %41 : vector<8x128xi1>, vector<8x128xf32>
    %c0_23 = arith.constant 0 : index
    %c0_24 = arith.constant 0 : index
    %43 = vector.load %arg8[%c0_23, %c0_24] : memref<8x128xf32, #tpu.memory_space<vmem>>, vector<8x128xf32>
    tpu.vector_store %arg8[%c0_23, %c0_24], %42 {strides = array<i32>} : memref<8x128xf32, #tpu.memory_space<vmem>>, vector<8x128xf32>,
    return
  }
  func.func @transform_0(%arg0: i32) -> (i32, i32) {
    %c0_i32 = arith.constant 0 : i32
    %c0_i32_0 = arith.constant 0 : i32
    return %arg0, %c0_i32 : i32, i32
  }
  func.func @transform_1(%arg0: i32) -> (i32, i32) {
    %c0_i32 = arith.constant 0 : i32
    %c0_i32_0 = arith.constant 0 : i32
    %c0_i32_1 = arith.constant 0 : i32
    return %c0_i32, %c0_i32_0 : i32, i32
  }
  func.func @transform_2(%arg0: i32) -> (i32, i32) {
    %c0_i32 = arith.constant 0 : i32
    %c0_i32_0 = arith.constant 0 : i32
    %c0_i32_1 = arith.constant 0 : i32
    return %c0_i32, %c0_i32_0 : i32, i32
  }
  func.func @transform_3(%arg0: i32) -> (i32, i32) {
    %c0_i32 = arith.constant 0 : i32
    %c0_i32_0 = arith.constant 0 : i32
    %c0_i32_1 = arith.constant 0 : i32
    return %c0_i32, %c0_i32_0 : i32, i32
  }
  func.func @transform_4(%arg0: i32) -> (i32, i32) {
    %c0_i32 = arith.constant 0 : i32
    %c0_i32_0 = arith.constant 0 : i32
    %c0_i32_1 = arith.constant 0 : i32
    return %c0_i32, %c0_i32_0 : i32, i32
  }
  func.func @transform_5(%arg0: i32) -> (i32, i32) {
    %c0_i32 = arith.constant 0 : i32
    %c0_i32_0 = arith.constant 0 : i32
    %c0_i32_1 = arith.constant 0 : i32
    return %c0_i32, %c0_i32_0 : i32, i32
  }
  func.func @transform_6(%arg0: i32) -> (i32, i32) {
    %c0_i32 = arith.constant 0 : i32
    %c0_i32_0 = arith.constant 0 : i32
    %c0_i32_1 = arith.constant 0 : i32
    return %c0_i32, %c0_i32_0 : i32, i32
  }
  func.func @transform_7(%arg0: i32) -> (i32, i32) {
    %c0_i32 = arith.constant 0 : i32
    %c0_i32_0 = arith.constant 0 : i32
    return %arg0, %c0_i32 : i32, i32
  }
}

</mosaic_0001>

<bundles_post_ra>
// kernel: tpu_custom_call.1
= control target key start
LH: loop header
LB: loop body
LE: loop exit
PB: predicated region body
PF: predicated region fallthrough
CT: control target
= control target key end

     0   :  { %s1516_s0 = inlined_call_operand.vmem [shape: f32[8,784], index: 0, kind: input, shape index: {}]   ;;  %s1517_s1 = inlined_call_operand.vmem [shape: f32[784,200], index: 1, kind: input, shape index: {}]   ;;  %s1518_s2 = inlined_call_operand.vmem [shape: f32[1,200], index: 2, kind: input, shape index: {}]   ;;  %s1519_s3 = inlined_call_operand.vmem [shape: f32[1,200], index: 3, kind: input, shape index: {}]   ;;  %s1520_s4 = inlined_call_operand.vmem [shape: f32[1,200], index: 4, kind: input, shape index: {}]   ;;  %s1521_s5 = inlined_call_operand.vmem [shape: f32[200,128], index: 5, kind: input, shape index: {}]   ;;  %s1522_s6 = inlined_call_operand.vmem [shape: f32[1,128], index: 6, kind: input, shape index: {}]   ;;  %s1523_s7 = inlined_call_operand.hbm [shape: f32[8,128], index: 7, kind: output, shape index: {}]  }
   0x1   :  { %v65_v0 = vld [vmem:[%s1517_s1 + $0xf8] sm:$0xff]  ;;  %v64_v1 = vld [vmem:[%s1517_s1 + $0xf0] sm:$0xff]  ;;  %v63_v2 = vld [vmem:[%s1517_s1 + $0xe8] sm:$0xff] }
   0x2   :  { %246 = vmatprep.subr.mxu0 %v65_v0  ;;  %v129_v3 = vld [vmem:[%s1517_s1 + $0x2f8] sm:$0xff]  ;;  %v62_v4 = vld [vmem:[%s1517_s1 + $0xe0] sm:$0xff]  ;;  %v128_v5 = vld [vmem:[%s1517_s1 + $0x2f0] sm:$0xff] }
   0x3   :  { %247 = vmatpush1.msra.mxu0 %v64_v1  ;;  %317 = vmatprep.subr.mxu1 %v129_v3  ;;  %v61_v6 = vld [vmem:[%s1517_s1 + $0xd8] sm:$0xff]  ;;  %v127_v7 = vld [vmem:[%s1517_s1 + $0x2e8] sm:$0xff]  ;;  %v60_v8 = vld [vmem:[%s1517_s1 + $0xd0] sm:$0xff] }
   0x4   :  { %248 = vmatprep.subr.mxu0 %v63_v2  ;;  %318 = vmatpush1.msra.mxu1 %v128_v5  ;;  %v126_v9 = vld [vmem:[%s1517_s1 + $0x2e0] sm:$0xff]  ;;  %v125_v10 = vld [vmem:[%s1517_s1 + $0x2d8] sm:$0xff]  ;;  %v59_v11 = vld [vmem:[%s1517_s1 + $0xc8] sm:$0xff] }
   0x5   :  { %249 = vmatpush1.msra.mxu0 %v62_v4  ;;  %319 = vmatprep.subr.mxu1 %v127_v7  ;;  %v124_v12 = vld [vmem:[%s1517_s1 + $0x2d0] sm:$0xff]  ;;  %v58_v13 = vld [vmem:[%s1517_s1 + $0xc0] sm:$0xff]  ;;  %v123_v14 = vld [vmem:[%s1517_s1 + $0x2c8] sm:$0xff] }
   0x6   :  { %250 = vmatprep.subr.mxu0 %v61_v6  ;;  %320 = vmatpush1.msra.mxu1 %v126_v9  ;;  %v57_v15 = vld [vmem:[%s1517_s1 + $0xb8] sm:$0xff]  ;;  %v122_v16 = vld [vmem:[%s1517_s1 + $0x2c0] sm:$0xff]  ;;  %v56_v17 = vld [vmem:[%s1517_s1 + $0xb0] sm:$0xff] }
   0x7   :  { %251 = vmatpush1.msra.mxu0 %v60_v8  ;;  %321 = vmatprep.subr.mxu1 %v125_v10  ;;  %v121_v18 = vld [vmem:[%s1517_s1 + $0x2b8] sm:$0xff]  ;;  %v55_v19 = vld [vmem:[%s1517_s1 + $0xa8] sm:$0xff]  ;;  %v120_v20 = vld [vmem:[%s1517_s1 + $0x2b0] sm:$0xff] }
   0x8   :  { %252 = vmatprep.subr.mxu0 %v59_v11  ;;  %322 = vmatpush1.msra.mxu1 %v124_v12  ;;  %v54_v21 = vld [vmem:[%s1517_s1 + $0xa0] sm:$0xff]  ;;  %v119_v22 = vld [vmem:[%s1517_s1 + $0x2a8] sm:$0xff]  ;;  %v53_v23 = vld [vmem:[%s1517_s1 + $0x98] sm:$0xff] }
   0x9   :  { %253 = vmatpush1.msra.mxu0 %v58_v13  ;;  %323 = vmatprep.subr.mxu1 %v123_v14  ;;  %v118_v24 = vld [vmem:[%s1517_s1 + $0x2a0] sm:$0xff]  ;;  %v52_v25 = vld [vmem:[%s1517_s1 + $0x90] sm:$0xff]  ;;  %v117_v26 = vld [vmem:[%s1517_s1 + $0x298] sm:$0xff] }
   0xa   :  { %254 = vmatprep.subr.mxu0 %v57_v15  ;;  %324 = vmatpush1.msra.mxu1 %v122_v16  ;;  %v51_v27 = vld [vmem:[%s1517_s1 + $0x88] sm:$0xff]  ;;  %v116_v28 = vld [vmem:[%s1517_s1 + $0x290] sm:$0xff]  ;;  %v50_v29 = vld [vmem:[%s1517_s1 + $0x80] sm:$0xff] }
   0xb   :  { %255 = vmatpush1.msra.mxu0 %v56_v17  ;;  %325 = vmatprep.subr.mxu1 %v121_v18  ;;  %v115_v30 = vld [vmem:[%s1517_s1 + $0x288] sm:$0xff]  ;;  %v49_v31 = vld [vmem:[%s1517_s1 + $0x78] sm:$0xff]  ;;  %v114_v32 = vld [vmem:[%s1517_s1 + $0x280] sm:$0xff] }
   0xc   :  { %256 = vmatprep.subr.mxu0 %v55_v19  ;;  %326 = vmatpush1.msra.mxu1 %v120_v20  ;;  %v48_v33 = vld [vmem:[%s1517_s1 + $0x70] sm:$0xff]  ;;  %v113_v34 = vld [vmem:[%s1517_s1 + $0x278] sm:$0xff]  ;;  %v47_v35 = vld [vmem:[%s1517_s1 + $0x68] sm:$0xff] }
   0xd   :  { %257 = vmatpush1.msra.mxu0 %v54_v21  ;;  %327 = vmatprep.subr.mxu1 %v119_v22  ;;  %v112_v36 = vld [vmem:[%s1517_s1 + $0x270] sm:$0xff]  ;;  %v46_v37 = vld [vmem:[%s1517_s1 + $0x60] sm:$0xff]  ;;  %v111_v38 = vld [vmem:[%s1517_s1 + $0x268] sm:$0xff] }
   0xe   :  { %258 = vmatprep.subr.mxu0 %v53_v23  ;;  %328 = vmatpush1.msra.mxu1 %v118_v24  ;;  %v45_v39 = vld [vmem:[%s1517_s1 + $0x58] sm:$0xff]  ;;  %v110_v40 = vld [vmem:[%s1517_s1 + $0x260] sm:$0xff]  ;;  %v44_v41 = vld [vmem:[%s1517_s1 + $0x50] sm:$0xff] }
   0xf   :  { %259 = vmatpush1.msra.mxu0 %v52_v25  ;;  %329 = vmatprep.subr.mxu1 %v117_v26  ;;  %v109_v42 = vld [vmem:[%s1517_s1 + $0x258] sm:$0xff]  ;;  %v43_v43 = vld [vmem:[%s1517_s1 + $0x48] sm:$0xff]  ;;  %v108_v44 = vld [vmem:[%s1517_s1 + $0x250] sm:$0xff] }
  0x10   :  { %260 = vmatprep.subr.mxu0 %v51_v27  ;;  %330 = vmatpush1.msra.mxu1 %v116_v28  ;;  %v42_v45 = vld [vmem:[%s1517_s1 + $0x40] sm:$0xff]  ;;  %v107_v46 = vld [vmem:[%s1517_s1 + $0x248] sm:$0xff]  ;;  %v41_v47 = vld [vmem:[%s1517_s1 + $0x38] sm:$0xff] }
  0x11   :  { %261 = vmatpush1.msra.mxu0 %v50_v29  ;;  %331 = vmatprep.subr.mxu1 %v115_v30  ;;  %v106_v48 = vld [vmem:[%s1517_s1 + $0x240] sm:$0xff]  ;;  %v40_v49 = vld [vmem:[%s1517_s1 + $0x30] sm:$0xff]  ;;  %v105_v50 = vld [vmem:[%s1517_s1 + $0x238] sm:$0xff] }
  0x12   :  { %262 = vmatprep.subr.mxu0 %v49_v31  ;;  %332 = vmatpush1.msra.mxu1 %v114_v32  ;;  %v39_v51 = vld [vmem:[%s1517_s1 + $0x28] sm:$0xff]  ;;  %v104_v52 = vld [vmem:[%s1517_s1 + $0x230] sm:$0xff]  ;;  %v38_v53 = vld [vmem:[%s1517_s1 + $0x20] sm:$0xff] }
  0x13   :  { %263 = vmatpush1.msra.mxu0 %v48_v33  ;;  %333 = vmatprep.subr.mxu1 %v113_v34  ;;  %v103_v54 = vld [vmem:[%s1517_s1 + $0x228] sm:$0xff]  ;;  %v37_v55 = vld [vmem:[%s1517_s1 + $0x18] sm:$0xff]  ;;  %v102_v56 = vld [vmem:[%s1517_s1 + $0x220] sm:$0xff] }
  0x14   :  { %264 = vmatprep.subr.mxu0 %v47_v35  ;;  %334 = vmatpush1.msra.mxu1 %v112_v36  ;;  %v36_v57 = vld [vmem:[%s1517_s1 + $0x10] sm:$0xff]  ;;  %v101_v58 = vld [vmem:[%s1517_s1 + $0x218] sm:$0xff]  ;;  %v35_v59 = vld [vmem:[%s1517_s1 + $0x8] sm:$0xff] }
  0x15   :  { %265 = vmatpush1.msra.mxu0 %v46_v37  ;;  %335 = vmatprep.subr.mxu1 %v111_v38  ;;  %v100_v60 = vld [vmem:[%s1517_s1 + $0x210] sm:$0xff]  ;;  %v34_v61 = vld [vmem:[%s1517_s1] sm:$0xff]  ;;  %v99_v62 = vld [vmem:[%s1517_s1 + $0x208] sm:$0xff] }
  0x16   :  { %266 = vmatprep.subr.mxu0 %v45_v39  ;;  %336 = vmatpush1.msra.mxu1 %v110_v40  ;;  %v97_v63 = vld [vmem:[%s1517_s1 + $0x1f8] sm:$0xff]  ;;  %v98_v0 = vld [vmem:[%s1517_s1 + $0x200] sm:$0xff]  ;;  %v96_v1 = vld [vmem:[%s1517_s1 + $0x1f0] sm:$0xff] }
  0x17   :  { %267 = vmatpush1.msra.mxu0 %v44_v41  ;;  %337 = vmatprep.subr.mxu1 %v109_v42  ;;  %v161_v2 = vld [vmem:[%s1517_s1 + $0x3f8] sm:$0xff]  ;;  %v95_v3 = vld [vmem:[%s1517_s1 + $0x1e8] sm:$0xff]  ;;  %v160_v4 = vld [vmem:[%s1517_s1 + $0x3f0] sm:$0xff] }
  0x18   :  { %268 = vmatprep.subr.mxu0 %v43_v43  ;;  %338 = vmatpush1.msra.mxu1 %v108_v44  ;;  %v94_v5 = vld [vmem:[%s1517_s1 + $0x1e0] sm:$0xff]  ;;  %v159_v6 = vld [vmem:[%s1517_s1 + $0x3e8] sm:$0xff]  ;;  %v93_v7 = vld [vmem:[%s1517_s1 + $0x1d8] sm:$0xff] }
  0x19   :  { %269 = vmatpush1.msra.mxu0 %v42_v45  ;;  %339 = vmatprep.subr.mxu1 %v107_v46  ;;  %v158_v8 = vld [vmem:[%s1517_s1 + $0x3e0] sm:$0xff]  ;;  %v92_v9 = vld [vmem:[%s1517_s1 + $0x1d0] sm:$0xff]  ;;  %v157_v10 = vld [vmem:[%s1517_s1 + $0x3d8] sm:$0xff] }
  0x1a   :  { %270 = vmatprep.subr.mxu0 %v41_v47  ;;  %340 = vmatpush1.msra.mxu1 %v106_v48  ;;  %v91_v11 = vld [vmem:[%s1517_s1 + $0x1c8] sm:$0xff]  ;;  %v156_v12 = vld [vmem:[%s1517_s1 + $0x3d0] sm:$0xff]  ;;  %v90_v13 = vld [vmem:[%s1517_s1 + $0x1c0] sm:$0xff] }
  0x1b   :  { %271 = vmatpush1.msra.mxu0 %v40_v49  ;;  %341 = vmatprep.subr.mxu1 %v105_v50  ;;  %v155_v14 = vld [vmem:[%s1517_s1 + $0x3c8] sm:$0xff]  ;;  %v89_v15 = vld [vmem:[%s1517_s1 + $0x1b8] sm:$0xff]  ;;  %v154_v16 = vld [vmem:[%s1517_s1 + $0x3c0] sm:$0xff] }
  0x1c   :  { %272 = vmatprep.subr.mxu0 %v39_v51  ;;  %342 = vmatpush1.msra.mxu1 %v104_v52  ;;  %v88_v17 = vld [vmem:[%s1517_s1 + $0x1b0] sm:$0xff]  ;;  %v153_v18 = vld [vmem:[%s1517_s1 + $0x3b8] sm:$0xff]  ;;  %v87_v19 = vld [vmem:[%s1517_s1 + $0x1a8] sm:$0xff] }
  0x1d   :  { %273 = vmatpush1.msra.mxu0 %v38_v53  ;;  %343 = vmatprep.subr.mxu1 %v103_v54  ;;  %v152_v20 = vld [vmem:[%s1517_s1 + $0x3b0] sm:$0xff]  ;;  %v86_v21 = vld [vmem:[%s1517_s1 + $0x1a0] sm:$0xff]  ;;  %v151_v22 = vld [vmem:[%s1517_s1 + $0x3a8] sm:$0xff] }
  0x1e   :  { %274 = vmatprep.subr.mxu0 %v37_v55  ;;  %344 = vmatpush1.msra.mxu1 %v102_v56  ;;  %v85_v23 = vld [vmem:[%s1517_s1 + $0x198] sm:$0xff]  ;;  %v150_v24 = vld [vmem:[%s1517_s1 + $0x3a0] sm:$0xff]  ;;  %v84_v25 = vld [vmem:[%s1517_s1 + $0x190] sm:$0xff] }
  0x1f   :  { %275 = vmatpush1.msra.mxu0 %v36_v57  ;;  %345 = vmatprep.subr.mxu1 %v101_v58  ;;  %v149_v26 = vld [vmem:[%s1517_s1 + $0x398] sm:$0xff]  ;;  %v83_v27 = vld [vmem:[%s1517_s1 + $0x188] sm:$0xff]  ;;  %v148_v28 = vld [vmem:[%s1517_s1 + $0x390] sm:$0xff] }
  0x20   :  { %276 = vmatprep.subr.mxu0 %v35_v59  ;;  %346 = vmatpush1.msra.mxu1 %v100_v60  ;;  %v82_v29 = vld [vmem:[%s1517_s1 + $0x180] sm:$0xff]  ;;  %v147_v30 = vld [vmem:[%s1517_s1 + $0x388] sm:$0xff]  ;;  %v81_v31 = vld [vmem:[%s1517_s1 + $0x178] sm:$0xff] }
  0x21   :  { %277 = vmatpush1.msra.mxu0 %v34_v61  ;;  %347 = vmatprep.subr.mxu1 %v99_v62  ;;  %v146_v32 = vld [vmem:[%s1517_s1 + $0x380] sm:$0xff]  ;;  %v80_v33 = vld [vmem:[%s1517_s1 + $0x170] sm:$0xff]  ;;  %v145_v34 = vld [vmem:[%s1517_s1 + $0x378] sm:$0xff] }
  0x22   :  { %278 = vmatprep.subr.mxu0 %v97_v63  ;;  %348 = vmatpush1.msra.mxu1 %v98_v0  ;;  %v79_v35 = vld [vmem:[%s1517_s1 + $0x168] sm:$0xff]  ;;  %v144_v36 = vld [vmem:[%s1517_s1 + $0x370] sm:$0xff]  ;;  %v78_v37 = vld [vmem:[%s1517_s1 + $0x160] sm:$0xff] }
  0x23   :  { %279 = vmatpush2.msra.mxu0 %v96_v1  ;;  %349 = vmatprep.subr.mxu1 %v161_v2  ;;  %v143_v38 = vld [vmem:[%s1517_s1 + $0x368] sm:$0xff]  ;;  %v77_v39 = vld [vmem:[%s1517_s1 + $0x158] sm:$0xff]  ;;  %v142_v40 = vld [vmem:[%s1517_s1 + $0x360] sm:$0xff] }
  0x24   :  { %280 = vmatprep.subr.mxu0 %v95_v3  ;;  %350 = vmatpush2.msra.mxu1 %v160_v4  ;;  %v76_v41 = vld [vmem:[%s1517_s1 + $0x150] sm:$0xff]  ;;  %v141_v42 = vld [vmem:[%s1517_s1 + $0x358] sm:$0xff]  ;;  %v75_v43 = vld [vmem:[%s1517_s1 + $0x148] sm:$0xff] }
  0x25   :  { %281 = vmatpush2.msra.mxu0 %v94_v5  ;;  %351 = vmatprep.subr.mxu1 %v159_v6  ;;  %v140_v44 = vld [vmem:[%s1517_s1 + $0x350] sm:$0xff]  ;;  %v74_v45 = vld [vmem:[%s1517_s1 + $0x140] sm:$0xff]  ;;  %v139_v46 = vld [vmem:[%s1517_s1 + $0x348] sm:$0xff] }
  0x26   :  { %282 = vmatprep.subr.mxu0 %v93_v7  ;;  %352 = vmatpush2.msra.mxu1 %v158_v8  ;;  %v73_v47 = vld [vmem:[%s1517_s1 + $0x138] sm:$0xff]  ;;  %v138_v48 = vld [vmem:[%s1517_s1 + $0x340] sm:$0xff]  ;;  %v72_v49 = vld [vmem:[%s1517_s1 + $0x130] sm:$0xff] }
  0x27   :  { %283 = vmatpush2.msra.mxu0 %v92_v9  ;;  %353 = vmatprep.subr.mxu1 %v157_v10  ;;  %v137_v50 = vld [vmem:[%s1517_s1 + $0x338] sm:$0xff]  ;;  %v71_v51 = vld [vmem:[%s1517_s1 + $0x128] sm:$0xff]  ;;  %v136_v52 = vld [vmem:[%s1517_s1 + $0x330] sm:$0xff] }
  0x28   :  { %284 = vmatprep.subr.mxu0 %v91_v11  ;;  %354 = vmatpush2.msra.mxu1 %v156_v12  ;;  %v70_v53 = vld [vmem:[%s1517_s1 + $0x120] sm:$0xff]  ;;  %v135_v54 = vld [vmem:[%s1517_s1 + $0x328] sm:$0xff]  ;;  %v69_v55 = vld [vmem:[%s1517_s1 + $0x118] sm:$0xff] }
  0x29   :  { %285 = vmatpush2.msra.mxu0 %v90_v13  ;;  %355 = vmatprep.subr.mxu1 %v155_v14  ;;  %v134_v56 = vld [vmem:[%s1517_s1 + $0x320] sm:$0xff]  ;;  %v68_v57 = vld [vmem:[%s1517_s1 + $0x110] sm:$0xff]  ;;  %v133_v58 = vld [vmem:[%s1517_s1 + $0x318] sm:$0xff] }
  0x2a   :  { %286 = vmatprep.subr.mxu0 %v89_v15  ;;  %356 = vmatpush2.msra.mxu1 %v154_v16  ;;  %v67_v59 = vld [vmem:[%s1517_s1 + $0x108] sm:$0xff]  ;;  %v66_v61 = vld [vmem:[%s1517_s1 + $0x100] sm:$0xff]  ;;  %v132_v62 = vld [vmem:[%s1517_s1 + $0x310] sm:$0xff] }
  0x2b   :  { %287 = vmatpush2.msra.mxu0 %v88_v17  ;;  %357 = vmatprep.subr.mxu1 %v153_v18  ;;  %v28_v60 = vld [vmem:[%s1516_s0 + $0x8] sm:$0xff]  ;;  %v27_v63 = vld [vmem:[%s1516_s0] sm:$0xff]  ;;  %v193_v1 = vld [vmem:[%s1517_s1 + $0x4f8] sm:$0xff] }
  0x2c   :  { %288 = vmatprep.subr.mxu0 %v87_v19  ;;  %358 = vmatpush2.msra.mxu1 %v152_v20  ;;  %v131_v0 = vld [vmem:[%s1517_s1 + $0x308] sm:$0xff]  ;;  %v130_v2 = vld [vmem:[%s1517_s1 + $0x300] sm:$0xff]  ;;  %v30_v3 = vld [vmem:[%s1516_s0 + $0x18] sm:$0xff] }
  0x2d   :  { %289 = vmatpush2.msra.mxu0 %v86_v21  ;;  %359 = vmatprep.subr.mxu1 %v151_v22  ;;  %v192_v4 = vld [vmem:[%s1517_s1 + $0x4f0] sm:$0xff]  ;;  %v191_v6 = vld [vmem:[%s1517_s1 + $0x4e8] sm:$0xff]  ;;  %v190_v7 = vld [vmem:[%s1517_s1 + $0x4e0] sm:$0xff] }
  0x2e   :  { %290 = vmatprep.subr.mxu0 %v85_v23  ;;  %360 = vmatpush2.msra.mxu1 %v150_v24  ;;  %v29_v5 = vld [vmem:[%s1516_s0 + $0x10] sm:$0xff]  ;;  %v229_v8 = vld [vmem:[%s1517_s1 + $0x618] sm:$0xff]  ;;  %v227_v12 = vld [vmem:[%s1517_s1 + $0x608] sm:$0xff] }
  0x2f   :  { %291 = vmatpush2.msra.mxu0 %v84_v25  ;;  %361 = vmatprep.subr.mxu1 %v149_v26  ;;  %v189_v9 = vld [vmem:[%s1517_s1 + $0x4d8] sm:$0xff]  ;;  %v228_v10 = vld [vmem:[%s1517_s1 + $0x610] sm:$0xff] }
  0x30   :  { %292 = vmatprep.subr.mxu0 %v83_v27  ;;  %362 = vmatpush2.msra.mxu1 %v148_v28  ;;  %v188_v11 = vld [vmem:[%s1517_s1 + $0x4d0] sm:$0xff] }
  0x31   :  { %293 = vmatpush2.msra.mxu0 %v82_v29  ;;  %363 = vmatprep.subr.mxu1 %v147_v30 }
  0x32   :  { %294 = vmatprep.subr.mxu0 %v81_v31  ;;  %364 = vmatpush2.msra.mxu1 %v146_v32 }
  0x33   :  { %295 = vmatpush2.msra.mxu0 %v80_v33  ;;  %365 = vmatprep.subr.mxu1 %v145_v34 }
  0x34   :  { %296 = vmatprep.subr.mxu0 %v79_v35  ;;  %366 = vmatpush2.msra.mxu1 %v144_v36 }
  0x35   :  { %297 = vmatpush2.msra.mxu0 %v78_v37  ;;  %367 = vmatprep.subr.mxu1 %v143_v38 }
  0x36   :  { %298 = vmatprep.subr.mxu0 %v77_v39  ;;  %368 = vmatpush2.msra.mxu1 %v142_v40 }
  0x37   :  { %299 = vmatpush2.msra.mxu0 %v76_v41  ;;  %369 = vmatprep.subr.mxu1 %v141_v42 }
  0x38   :  { %300 = vmatprep.subr.mxu0 %v75_v43  ;;  %370 = vmatpush2.msra.mxu1 %v140_v44 }
  0x39   :  { %301 = vmatpush2.msra.mxu0 %v74_v45  ;;  %371 = vmatprep.subr.mxu1 %v139_v46 }
  0x3a   :  { %302 = vmatprep.subr.mxu0 %v73_v47  ;;  %372 = vmatpush2.msra.mxu1 %v138_v48 }
  0x3b   :  { %303 = vmatpush2.msra.mxu0 %v72_v49  ;;  %373 = vmatprep.subr.mxu1 %v137_v50 }
  0x3c   :  { %304 = vmatprep.subr.mxu0 %v71_v51  ;;  %374 = vmatpush2.msra.mxu1 %v136_v52 }
  0x3d   :  { %305 = vmatpush2.msra.mxu0 %v70_v53  ;;  %375 = vmatprep.subr.mxu1 %v135_v54 }
  0x3e   :  { %306 = vmatprep.subr.mxu0 %v69_v55  ;;  %376 = vmatpush2.msra.mxu1 %v134_v56 }
  0x3f   :  { %307 = vmatpush2.msra.mxu0 %v68_v57  ;;  %377 = vmatprep.subr.mxu1 %v133_v58 }
  0x40   :  { %308 = vmatprep.subr.mxu0 %v67_v59  ;;  %310 = vmatprep.mubr.f32.mxu0 %v28_v60 }
  0x41   :  { %309 = vmatpush2.msra.mxu0 %v66_v61  ;;  %378 = vmatpush2.msra.mxu1 %v132_v62 }
  0x42   :  { %311 = vmatmul.mubr.f32.vlgmr.msra.gmra.mxu0 %v27_v63  ;;  %379 = vmatprep.subr.mxu1 %v131_v0 }
  0x43   :  { %388 = vmatprep.subr.mxu0 %v193_v1  ;;  %380 = vmatpush2.msra.mxu1 %v130_v2 }
  0x44   :  { %381 = vmatprep.mubr.f32.mxu1 %v30_v3  ;;  %389 = vmatpush1.msra.mxu0 %v192_v4 }
  0x45   :  { %382 = vmatmul.mubr.f32.vlgmr.msra.gmra.mxu1 %v29_v5  ;;  %390 = vmatprep.subr.mxu0 %v191_v6 }
  0x46   :  { %12 = vsyncpa [#allocation3], 0  ;;  %391 = vmatpush1.msra.mxu0 %v190_v7  ;;  %v187_v13 = vld [vmem:[%s1517_s1 + $0x4c8] sm:$0xff]  ;;  %487 = vmatprep.subr.mxu1 %v229_v8  ;;  %v186_v15 = vld [vmem:[%s1517_s1 + $0x4c0] sm:$0xff]  ;;  %vm242_vm0 = vcmask 130048   ;;  %v736_v22 = vmov 0.0  }
  0x47   :  { %v32_v14 = vld [vmem:[%s1516_s0 + $0x28] sm:$0xff]  ;;  %392 = vmatprep.subr.mxu0 %v189_v9  ;;  %488 = vmatpush1.msra.mxu1 %v228_v10  ;;  %v226_v16 = vld [vmem:[%s1517_s1 + $0x600] sm:$0xff]  ;;  %v185_v17 = vld [vmem:[%s1517_s1 + $0x4b8] sm:$0xff]  ;;  %vm536_vm3 = vcmask 588800  }
  0x48   :  { %393 = vmatpush1.msra.mxu0 %v188_v11  ;;  %489 = vmatprep.subr.mxu1 %v227_v12  ;;  %v184_v18 = vld [vmem:[%s1517_s1 + $0x4b0] sm:$0xff]  ;;  %v183_v20 = vld [vmem:[%s1517_s1 + $0x4a8] sm:$0xff]  ;;  %v182_v21 = vld [vmem:[%s1517_s1 + $0x4a0] sm:$0xff]  ;;  %v232_v12 = vlaneseq }
  0x49   :  { %394 = vmatprep.subr.mxu0 %v187_v13  ;;  %452 = vmatprep.mubr.f32.mxu0 %v32_v14  ;;  %v33_v19 = vld [vmem:[%s1516_s0 + $0x30] sm:$0xff]  ;;  %v181_v23 = vld [vmem:[%s1517_s1 + $0x498] sm:$0xff]  ;;  %v179_v25 = vld [vmem:[%s1517_s1 + $0x488] sm:$0xff] }
  0x4a   :  { %395 = vmatpush1.msra.mxu0 %v186_v15  ;;  %490 = vmatpush1.msra.mxu1 %v226_v16  ;;  %v180_v24 = vld [vmem:[%s1517_s1 + $0x490] sm:$0xff]  ;;  %v178_v26 = vld [vmem:[%s1517_s1 + $0x480] sm:$0xff]  ;;  %v177_v27 = vld [vmem:[%s1517_s1 + $0x478] sm:$0xff]  ;;  %v233_v13 = vshrl.u32 %v232_v12, 7 }
  0x4b   :  { %396 = vmatprep.subr.mxu0 %v185_v17  ;;  %523 = vmatprep.mubr.f32.mxu1 %v736_v22  ;;  %v176_v28 = vld [vmem:[%s1517_s1 + $0x470] sm:$0xff]  ;;  %v175_v29 = vld [vmem:[%s1517_s1 + $0x468] sm:$0xff]  ;;  %v174_v30 = vld [vmem:[%s1517_s1 + $0x460] sm:$0xff] }
  0x4c   :  { %397 = vmatpush1.msra.mxu0 %v184_v18  ;;  %707 = vmatmul.mubr.msk.f32.vlgmr.msra.gmra.mxu1 %vm242_vm0, %v33_v19  ;;  %v173_v31 = vld [vmem:[%s1517_s1 + $0x458] sm:$0xff]  ;;  %v172_v32 = vld [vmem:[%s1517_s1 + $0x450] sm:$0xff]  ;;  %v171_v33 = vld [vmem:[%s1517_s1 + $0x448] sm:$0xff]  ;;  %v1389_v14 = vsub.s32 0, %v233_v13  ;;  %v1394_v16 = vsub.s32 1, %v233_v13 }
  0x4d   :  { %398 = vmatprep.subr.mxu0 %v183_v20  ;;  %619 = vmatprep.subr.mxu1 %v736_v22  ;;  %v170_v34 = vld [vmem:[%s1517_s1 + $0x440] sm:$0xff]  ;;  %v169_v35 = vld [vmem:[%s1517_s1 + $0x438] sm:$0xff]  ;;  %v168_v36 = vld [vmem:[%s1517_s1 + $0x430] sm:$0xff] }
  0x4e   :  { %399 = vmatpush1.msra.mxu0 %v182_v21  ;;  %v167_v37 = vld [vmem:[%s1517_s1 + $0x428] sm:$0xff]  ;;  %v166_v38 = vld [vmem:[%s1517_s1 + $0x420] sm:$0xff]  ;;  %v165_v39 = vld [vmem:[%s1517_s1 + $0x418] sm:$0xff] }
  0x4f   :  { %400 = vmatprep.subr.mxu0 %v181_v23  ;;  %v164_v40 = vld [vmem:[%s1517_s1 + $0x410] sm:$0xff]  ;;  %v163_v41 = vld [vmem:[%s1517_s1 + $0x408] sm:$0xff]  ;;  %v162_v42 = vld [vmem:[%s1517_s1 + $0x400] sm:$0xff] }
  0x50   :  { %401 = vmatpush1.msra.mxu0 %v180_v24  ;;  %v225_v43 = vld [vmem:[%s1517_s1 + $0x5f8] sm:$0xff]  ;;  %v224_v44 = vld [vmem:[%s1517_s1 + $0x5f0] sm:$0xff]  ;;  %v223_v45 = vld [vmem:[%s1517_s1 + $0x5e8] sm:$0xff] }
  0x51   :  { %402 = vmatprep.subr.mxu0 %v179_v25  ;;  %v222_v46 = vld [vmem:[%s1517_s1 + $0x5e0] sm:$0xff]  ;;  %v221_v47 = vld [vmem:[%s1517_s1 + $0x5d8] sm:$0xff]  ;;  %v220_v48 = vld [vmem:[%s1517_s1 + $0x5d0] sm:$0xff] }
  0x52   :  { %403 = vmatpush1.msra.mxu0 %v178_v26  ;;  %v219_v49 = vld [vmem:[%s1517_s1 + $0x5c8] sm:$0xff]  ;;  %v218_v50 = vld [vmem:[%s1517_s1 + $0x5c0] sm:$0xff]  ;;  %v217_v51 = vld [vmem:[%s1517_s1 + $0x5b8] sm:$0xff] }
  0x53   :  { %404 = vmatprep.subr.mxu0 %v177_v27  ;;  %v216_v52 = vld [vmem:[%s1517_s1 + $0x5b0] sm:$0xff]  ;;  %v215_v53 = vld [vmem:[%s1517_s1 + $0x5a8] sm:$0xff]  ;;  %v214_v54 = vld [vmem:[%s1517_s1 + $0x5a0] sm:$0xff] }
  0x54   :  { %405 = vmatpush1.msra.mxu0 %v176_v28  ;;  %v213_v55 = vld [vmem:[%s1517_s1 + $0x598] sm:$0xff]  ;;  %v212_v56 = vld [vmem:[%s1517_s1 + $0x590] sm:$0xff]  ;;  %v211_v57 = vld [vmem:[%s1517_s1 + $0x588] sm:$0xff] }
  0x55   :  { %406 = vmatprep.subr.mxu0 %v175_v29  ;;  %v210_v58 = vld [vmem:[%s1517_s1 + $0x580] sm:$0xff]  ;;  %v209_v59 = vld [vmem:[%s1517_s1 + $0x578] sm:$0xff]  ;;  %v208_v60 = vld [vmem:[%s1517_s1 + $0x570] sm:$0xff] }
  0x56   :  { %407 = vmatpush1.msra.mxu0 %v174_v30  ;;  %v207_v61 = vld [vmem:[%s1517_s1 + $0x568] sm:$0xff]  ;;  %v206_v62 = vld [vmem:[%s1517_s1 + $0x560] sm:$0xff]  ;;  %v205_v63 = vld [vmem:[%s1517_s1 + $0x558] sm:$0xff] }
  0x57   :  { %408 = vmatprep.subr.mxu0 %v173_v31  ;;  %v204_v0 = vld [vmem:[%s1517_s1 + $0x550] sm:$0xff]  ;;  %v203_v1 = vld [vmem:[%s1517_s1 + $0x548] sm:$0xff]  ;;  %v202_v2 = vld [vmem:[%s1517_s1 + $0x540] sm:$0xff] }
  0x58   :  { %409 = vmatpush1.msra.mxu0 %v172_v32  ;;  %v201_v3 = vld [vmem:[%s1517_s1 + $0x538] sm:$0xff]  ;;  %v200_v4 = vld [vmem:[%s1517_s1 + $0x530] sm:$0xff]  ;;  %v199_v5 = vld [vmem:[%s1517_s1 + $0x528] sm:$0xff] }
  0x59   :  { %410 = vmatprep.subr.mxu0 %v171_v33  ;;  %v198_v6 = vld [vmem:[%s1517_s1 + $0x520] sm:$0xff]  ;;  %v197_v7 = vld [vmem:[%s1517_s1 + $0x518] sm:$0xff]  ;;  %v196_v8 = vld [vmem:[%s1517_s1 + $0x510] sm:$0xff] }
  0x5a   :  { %411 = vmatpush1.msra.mxu0 %v170_v34  ;;  %v195_v9 = vld [vmem:[%s1517_s1 + $0x508] sm:$0xff]  ;;  %v194_v10 = vld [vmem:[%s1517_s1 + $0x500] sm:$0xff] }
  0x5b   :  { %412 = vmatprep.subr.mxu0 %v169_v35  ;;  %v31_v11 = vld [vmem:[%s1516_s0 + $0x20] sm:$0xff] }
  0x5c   :  { %413 = vmatpush1.msra.mxu0 %v168_v36  ;;  %v230_v15 = vld [vmem:[%s1518_s2] sm:$0x3] }
  0x5d   :  { %414 = vmatprep.subr.mxu0 %v167_v37  ;;  %v235_v18 = vrot.slane %v230_v15, %v1389_v14  ;;  %v239_v19 = vrot.slane %v230_v15, %v1394_v16  ;;  %v556_v15 = vld [vmem:[%s1519_s3] sm:$0x3] }
  0x5e   :  { %415 = vmatpush1.msra.mxu0 %v166_v38 }
  0x5f   :  { %416 = vmatprep.subr.mxu0 %v165_v39 }
  0x60   :  { %417 = vmatpush1.msra.mxu0 %v164_v40 }
  0x61   :  { %418 = vmatprep.subr.mxu0 %v163_v41 }
  0x62   :  { %419 = vmatpush1.msra.mxu0 %v162_v42  ;;  %v599_v42 = vld [vmem:[%s1521_s5 + $0x78] sm:$0xff] }
  0x63   :  { %420 = vmatprep.subr.mxu0 %v225_v43  ;;  %v598_v43 = vld [vmem:[%s1521_s5 + $0x70] sm:$0xff]  ;;  %620 = vmatpush1.msra.mxu1 %v599_v42 }
  0x64   :  { %421 = vmatpush2.msra.mxu0 %v224_v44  ;;  %621 = vmatprep.subr.mxu1 %v736_v22  ;;  %v597_v44 = vld [vmem:[%s1521_s5 + $0x68] sm:$0xff] }
  0x65   :  { %422 = vmatprep.subr.mxu0 %v223_v45  ;;  %622 = vmatpush1.msra.mxu1 %v598_v43  ;;  %v596_v45 = vld [vmem:[%s1521_s5 + $0x60] sm:$0xff] }
  0x66   :  { %423 = vmatpush2.msra.mxu0 %v222_v46  ;;  %623 = vmatprep.subr.mxu1 %v736_v22  ;;  %v595_v46 = vld [vmem:[%s1521_s5 + $0x58] sm:$0xff] }
  0x67   :  { %424 = vmatprep.subr.mxu0 %v221_v47  ;;  %624 = vmatpush1.msra.mxu1 %v597_v44  ;;  %v594_v47 = vld [vmem:[%s1521_s5 + $0x50] sm:$0xff] }
  0x68   :  { %425 = vmatpush2.msra.mxu0 %v220_v48  ;;  %625 = vmatprep.subr.mxu1 %v736_v22  ;;  %v593_v48 = vld [vmem:[%s1521_s5 + $0x48] sm:$0xff] }
  0x69   :  { %426 = vmatprep.subr.mxu0 %v219_v49  ;;  %626 = vmatpush1.msra.mxu1 %v596_v45  ;;  %v592_v49 = vld [vmem:[%s1521_s5 + $0x40] sm:$0xff] }
  0x6a   :  { %427 = vmatpush2.msra.mxu0 %v218_v50  ;;  %627 = vmatprep.subr.mxu1 %v736_v22  ;;  %v591_v50 = vld [vmem:[%s1521_s5 + $0x38] sm:$0xff] }
  0x6b   :  { %428 = vmatprep.subr.mxu0 %v217_v51  ;;  %628 = vmatpush1.msra.mxu1 %v595_v46  ;;  %v590_v51 = vld [vmem:[%s1521_s5 + $0x30] sm:$0xff] }
  0x6c   :  { %429 = vmatpush2.msra.mxu0 %v216_v52  ;;  %629 = vmatprep.subr.mxu1 %v736_v22  ;;  %v589_v52 = vld [vmem:[%s1521_s5 + $0x28] sm:$0xff] }
  0x6d   :  { %430 = vmatprep.subr.mxu0 %v215_v53  ;;  %630 = vmatpush1.msra.mxu1 %v594_v47  ;;  %v588_v53 = vld [vmem:[%s1521_s5 + $0x20] sm:$0xff] }
  0x6e   :  { %431 = vmatpush2.msra.mxu0 %v214_v54  ;;  %631 = vmatprep.subr.mxu1 %v736_v22 }
  0x6f   :  { %432 = vmatprep.subr.mxu0 %v213_v55  ;;  %632 = vmatpush1.msra.mxu1 %v593_v48 }
  0x70   :  { %433 = vmatpush2.msra.mxu0 %v212_v56  ;;  %633 = vmatprep.subr.mxu1 %v736_v22 }
  0x71   :  { %434 = vmatprep.subr.mxu0 %v211_v57  ;;  %634 = vmatpush1.msra.mxu1 %v592_v49 }
  0x72   :  { %435 = vmatpush2.msra.mxu0 %v210_v58  ;;  %635 = vmatprep.subr.mxu1 %v736_v22 }
  0x73   :  { %436 = vmatprep.subr.mxu0 %v209_v59  ;;  %636 = vmatpush1.msra.mxu1 %v591_v50 }
  0x74   :  { %437 = vmatpush2.msra.mxu0 %v208_v60  ;;  %637 = vmatprep.subr.mxu1 %v736_v22 }
  0x75   :  { %438 = vmatprep.subr.mxu0 %v207_v61  ;;  %638 = vmatpush1.msra.mxu1 %v590_v51 }
  0x76   :  { %439 = vmatpush2.msra.mxu0 %v206_v62  ;;  %639 = vmatprep.subr.mxu1 %v736_v22  ;;  %v587_v62 = vld [vmem:[%s1521_s5 + $0x18] sm:$0xff] }
  0x77   :  { %440 = vmatprep.subr.mxu0 %v205_v63  ;;  %640 = vmatpush1.msra.mxu1 %v589_v52  ;;  %v586_v63 = vld [vmem:[%s1521_s5 + $0x10] sm:$0xff] }
  0x78   :  { %441 = vmatpush2.msra.mxu0 %v204_v0  ;;  %641 = vmatprep.subr.mxu1 %v736_v22  ;;  %v585_v0 = vld [vmem:[%s1521_s5 + $0x8] sm:$0xff] }
  0x79   :  { %442 = vmatprep.subr.mxu0 %v203_v1  ;;  %642 = vmatpush1.msra.mxu1 %v588_v53  ;;  %v584_v1 = vld [vmem:[%s1521_s5] sm:$0xff] }
  0x7a   :  { %443 = vmatpush2.msra.mxu0 %v202_v2  ;;  %643 = vmatprep.subr.mxu1 %v736_v22  ;;  %v608_v2 = vld [vmem:[%s1521_s5 + $0xc0] sm:$0xff] }
  0x7b   :  { %444 = vmatprep.subr.mxu0 %v201_v3  ;;  %644 = vmatpush1.msra.mxu1 %v587_v62  ;;  %v607_v3 = vld [vmem:[%s1521_s5 + $0xb8] sm:$0xff] }
  0x7c   :  { %445 = vmatpush2.msra.mxu0 %v200_v4  ;;  %645 = vmatprep.subr.mxu1 %v736_v22  ;;  %v606_v4 = vld [vmem:[%s1521_s5 + $0xb0] sm:$0xff] }
  0x7d   :  { %446 = vmatprep.subr.mxu0 %v199_v5  ;;  %646 = vmatpush1.msra.mxu1 %v586_v63  ;;  %v605_v5 = vld [vmem:[%s1521_s5 + $0xa8] sm:$0xff] }
  0x7e   :  { %447 = vmatpush2.msra.mxu0 %v198_v6  ;;  %647 = vmatprep.subr.mxu1 %v736_v22  ;;  %v604_v6 = vld [vmem:[%s1521_s5 + $0xa0] sm:$0xff] }
  0x7f   :  { %448 = vmatprep.subr.mxu0 %v197_v7  ;;  %648 = vmatpush1.msra.mxu1 %v585_v0  ;;  %v603_v7 = vld [vmem:[%s1521_s5 + $0x98] sm:$0xff] }
  0x80   :  { %449 = vmatpush2.msra.mxu0 %v196_v8  ;;  %649 = vmatprep.subr.mxu1 %v736_v22  ;;  %v602_v8 = vld [vmem:[%s1521_s5 + $0x90] sm:$0xff] }
  0x81   :  { %450 = vmatprep.subr.mxu0 %v195_v9  ;;  %650 = vmatpush1.msra.mxu1 %v584_v1  ;;  %v601_v9 = vld [vmem:[%s1521_s5 + $0x88] sm:$0xff] }
  0x82   :  { %451 = vmatpush2.msra.mxu0 %v194_v10  ;;  %665 = vmatprep.subr.mxu1 %v736_v22  ;;  %v600_v10 = vld [vmem:[%s1521_s5 + $0x80] sm:$0xff]  ;;  %s737_s5 = smov [#allocation2]  }
  0x83   :  { %453 = vmatmul.mubr.f32.vlgmr.msra.gmra.mxu0 %v31_v11  ;;  %666 = vmatpush2.msra.mxu1 %v608_v2  ;;  %s699_s2 = sshll.u32 %s737_s5, 4  ;;  %s700_s2 = int_to_ptr.vmem [resolvable:$true] %s699_s2 }
  0x84   :  { %667 = vmatprep.subr.mxu1 %v736_v22  ;;  %s714_s18 = scalar_lea.vmem %s700_s2, 128  ;;  %p719_p1 = scmp.lt.s32.totalorder %s700_s2, %s700_s2 }
  0x85   :  { %668 = vmatpush2.msra.mxu1 %v607_v3  ;;  %p715_p0 = scmp.ne.s32.totalorder %s700_s2, %s714_s18  ;;  %p720_p2 = scmp.lt.s32.totalorder %s714_s18, %s714_s18 }
  0x86   :  { %669 = vmatprep.subr.mxu1 %v736_v22 }
  0x87   :  { %670 = vmatpush2.msra.mxu1 %v606_v4  ;;  %p721_p3 = por %p720_p2, %p719_p1 }
  0x88   :  { %671 = vmatprep.subr.mxu1 %v736_v22 }
  0x89   :  { %672 = vmatpush2.msra.mxu1 %v605_v5  ;;  %p722_p4 = pnand %p721_p3, %p715_p0 }
  0x8a   :  { %673 = vmatprep.subr.mxu1 %v736_v22 }
  0x8b   :  { %674 = vmatpush2.msra.mxu1 %v604_v6 }
  0x8c   :  { %675 = vmatprep.subr.mxu1 %v736_v22 }
  0x8d   :  { %676 = vmatpush2.msra.mxu1 %v603_v7 }
  0x8e   :  { %677 = vmatprep.subr.mxu1 %v736_v22 }
  0x8f   :  { %678 = vmatpush2.msra.mxu1 %v602_v8 }
  0x90   :  { %679 = vmatprep.subr.mxu1 %v736_v22 }
  0x91   :  { %680 = vmatpush2.msra.mxu1 %v601_v9 }
  0x92   :  { %681 = vmatprep.subr.mxu1 %v736_v22 }
  0x93   :  { %682 = vmatpush2.msra.mxu1 %v600_v10 }
 0x102   :  { %v312_v17 = vpop.f32.mrf.mxu0 }
 0x103   :  { %v313_v23 = vadd.f32 %v312_v17, %v235_v18  ;;  %v570_v17 = vld [vmem:[%s1520_s4] sm:$0x3]  ;;  %v565_v18 = vrot.slane %v556_v15, %v1394_v16 }
 0x104   :  { %v314_v20 = vpop.f32.mrf.mxu0  ;;  %v579_v22 = vrot.slane %v570_v17, %v1394_v16 }
 0x105   :  { %v383_v21 = vpop.f32.mrf.mxu1  ;;  %v315_v24 = vadd.f32 %v314_v20, %v239_v19  ;;  %v561_v19 = vrot.slane %v556_v15, %v1389_v14 }
 0x106   :  { %v384_v26 = vadd.f32 %v383_v21, %v313_v23 }
 0x107   :  { %v385_v25 = vpop.f32.mrf.mxu1 }
 0x108   :  { %v386_v29 = vadd.f32 %v385_v25, %v315_v24  ;;  %v575_v24 = vrot.slane %v570_v17, %v1389_v14 }
 0x10c   :  { %v525_v28 = vpop.f32.mrf.mxu1 }
 0x10e   :  { %v527_v34 = vpop.f32.mrf.mxu1 }
 0x143   :  { %v454_v27 = vpop.f32.mrf.mxu0 }
 0x144   :  { %v455_v30 = vadd.f32 %v454_v27, %v384_v26 }
 0x145   :  { %v456_v31 = vpop.f32.mrf.mxu0 }
 0x146   :  { %v526_v32 = vadd.f32 %v525_v28, %v455_v30  ;;  %v457_v33 = vadd.f32 %v456_v31, %v386_v29  ;;  %v708_v29 = vld [vmem:[%s1522_s6] ss:$0 sm:$0xff] }
 0x148   :  { %v528_v35 = vadd.f32 %v527_v34, %v457_v33  ;;  %v532_v36 = vmul.f32 0.02, %v526_v32  ;;  %vm530_vm1 = vcmp.ge.f32.partialorder %v526_v32, 0.0 }
 0x14a   :  { %v533_v37 = vmul.f32 0.02, %v528_v35  ;;  %vm531_vm2 = vcmp.ge.f32.partialorder %v528_v35, 0.0  ;;  %v534_v39 = vsel %vm530_vm1, %v526_v32, %v532_v36 }
 0x14c   :  { %v535_v38 = vsel %vm531_vm2, %v528_v35, %v533_v37 }
 0x14d   :  { %v537_v40 = vsel %vm536_vm3, %v535_v38, 0.0 }
 0x14e   :  { %v538_v41 = vadd.f32 %v537_v40, %v534_v39 }
 0x150   :  { %539 = vadd.xlane.f32.xlu0 %v538_v41 }
 0x1d9   :  { %v540_v54 = vpop.xlane.xlu0 %539 }
 0x1da   :  { %v542_v55 = vmul.f32 0.005, %v540_v54 }
 0x1dc   :  { %v543_v56 = vsub.f32 %v534_v39, %v542_v55  ;;  %v544_v57 = vsub.f32 %v535_v38, %v542_v55 }
 0x1de   :  { %v545_v58 = vmul.f32 %v543_v56, %v543_v56  ;;  %v546_v59 = vmul.f32 %v544_v57, %v544_v57 }
 0x1e0   :  { %v547_v60 = vsel %vm536_vm3, %v546_v59, 0.0 }
 0x1e1   :  { %v548_v61 = vadd.f32 %v547_v60, %v545_v58 }
 0x1e3   :  { %549 = vadd.xlane.f32.xlu0 %v548_v61 }
 0x26c   :  { %v550_v11 = vpop.xlane.xlu0 %549 }
 0x26d   :  { %v551_v12 = vmul.f32 0.005, %v550_v11 }
 0x26f   :  { %v552_v13 = vadd.f32 1e-05, %v551_v12 }
 0x271   :  { %712 = vrsqrt.f32 %v552_v13 }
 0x27e   :  { %v713_v20 = vpop.eup %712 }
 0x27f   :  { %v555_v21 = vmul.f32 %v713_v20, %v544_v57  ;;  %v554_v23 = vmul.f32 %v713_v20, %v543_v56 }
 0x281   :  { %v569_v25 = vmul.f32 %v565_v18, %v555_v21  ;;  %v568_v26 = vmul.f32 %v561_v19, %v554_v23 }
 0x283   :  { %v583_v27 = vadd.f32 %v579_v22, %v569_v25  ;;  %v582_v28 = vadd.f32 %v575_v24, %v568_v26 }
 0x285   :  { %709 = vmatprep.mubr.msk.f32.mxu1 %vm536_vm3, %v583_v27 }
 0x286   :  { %684 = vmatmul.mubr.f32.vlgmr.msra.gmra.mxu1 %v582_v28 }
 0x346   :  { %v685_v30 = vpop.f32.mrf.mxu1 }
 0x347   :  { %v686_v31 = vadd.f32 %v708_v29, %v685_v30 }
 0x348   :  { %v687_v32 = vpop.f32.mrf.mxu1 }
 0x349   :  { %v690_v16 = vmul.f32 0.02, %v686_v31  ;;  %vm689_vm4 = vcmp.ge.f32.partialorder %v686_v31, 0.0 }
 0x34b   :  { %v691_v14 = vsel %vm689_vm4, %v686_v31, %v690_v16 }
 0x34c   :  { %692 = vst [vmem:[#allocation2] sm:$0xff] %v691_v14 }
 0x34d   :  { %725 = shalt.err (!%p722_p4)
}
 0x34e   :  { %702 = dma.vmem_to_hbm [thread:$0]  %s700_s2, 128, %s1523_s7, [#allocation3]  }
 0x34f   :  { %734 = dma.done.wait [#allocation3], 128  }
 0x350   :  { %735 = vsyncadd [#allocation3], 4294967168 }
 0x351   :  { %706 = vsyncpa [#allocation3], 1 }

</bundles_post_ra>
